<compile_context>
chip_gen: v6e
topology: v6e:2x2x1
jax: 0.10.0
libtpu: 0.0.40
codegen_flags: <defaults>
</compile_context>

<pallas_src>
import math
import jax
import jax.numpy as jnp
from jax.experimental import pallas as pl
from jax.experimental.pallas import tpu as pltpu


# ---------------------------------------------------------------------------
# Fused Pallas kernel
# ---------------------------------------------------------------------------
def _advmpdp_fused_kernel(
        pemb_ref, demb_ref,                      # (Np,E) bf16, (Nd,E) bf16
        wp_ref, bp_ref,                          # (E,3H) bf16, (1,3H) f32
        wd_ref, bd_ref,                          # (E,3H) bf16, (1,3H) f32
        clfw_ref, clfb_ref,                      # (6,H) f32 VMEM, (6,) f32 SMEM
        dti_idx_ref, ppi_idx_ref, ddi_idx_ref,   # (P,2) int32 each, VMEM
        pghid_ppi_ref, pghid_dti_ref,            # (2Np,H) f32 outputs
        dghid_ddi_ref, dghid_dti_ref,            # (2Nd,H) f32 outputs
        dti_sig_ref, ppi_sig_ref, ddi_sig_ref):  # (P,2) f32 outputs: [task, share]
    H = clfw_ref.shape[1]

    # ---- fused projections: one MXU matmul per entity type (3 heads batched) ----
    hp = jnp.dot(pemb_ref[...], wp_ref[...], preferred_element_type=jnp.float32)
    hp = jnp.maximum(hp + bp_ref[...], 0.0)                       # (Np, 3H), relu fused
    hd = jnp.dot(demb_ref[...], wd_ref[...], preferred_element_type=jnp.float32)
    hd = jnp.maximum(hd + bd_ref[...], 0.0)                       # (Nd, 3H)

    # TODO(synk): original forward references undefined `pghid_*` names (missing GNN
    # step in the source); interpreted as pghid_X = relu(concat(phid_X, phid_share)),
    # pghid_share = relu(phid_share). relu distributes over concat, so relu is fused.
    p_share = hp[:, 2 * H:3 * H]                                  # == relu(phid_share)
    d_share = hd[:, 2 * H:3 * H]
    pghid_ppi = jnp.concatenate([hp[:, 0:H], p_share], axis=0)    # (2Np, H)
    pghid_dti = jnp.concatenate([hp[:, H:2 * H], p_share], axis=0)
    dghid_ddi = jnp.concatenate([hd[:, 0:H], d_share], axis=0)    # (2Nd, H)
    dghid_dti = jnp.concatenate([hd[:, H:2 * H], d_share], axis=0)

    # hidden states written once, already in their final concatenated layout
    pghid_ppi_ref[...] = pghid_ppi
    pghid_dti_ref[...] = pghid_dti
    dghid_ddi_ref[...] = dghid_ddi
    dghid_dti_ref[...] = dghid_dti

    # ---- pair classifiers, fully in-kernel ---------------------------------------
    def gather_rows(mat, idx_col):
        # mat: (R, H) f32 value, idx_col: (P, 1) int32 -> (P, H) via one-hot MXU matmul
        npairs, rows = idx_col.shape[0], mat.shape[0]
        sel = (jax.lax.broadcasted_iota(jnp.int32, (npairs, rows), 1)
               == idx_col).astype(jnp.float32)
        return jnp.dot(sel, mat, preferred_element_type=jnp.float32)

    def head(idx, a_mat, b_mat, k):
        # sigmoid(<gather(a)*gather(b), w_k> + b_k) for head row k -> (P, 1)
        a = gather_rows(a_mat, idx[:, 0:1])
        b = gather_rows(b_mat, idx[:, 1:2])
        w = clfw_ref[k:k + 1, :]                                   # (1, H)
        logit = jnp.sum(a * b * w, axis=-1, keepdims=True) + clfb_ref[k]
        return jax.nn.sigmoid(logit)

    dti_idx = dti_idx_ref[...]
    ppi_idx = ppi_idx_ref[...]
    ddi_idx = ddi_idx_ref[...]

    dti_sig_ref[...] = jnp.concatenate(
        [head(dti_idx, dghid_dti, pghid_dti, 0),
         head(dti_idx, p_share, p_share, 3)], axis=1)
    ppi_sig_ref[...] = jnp.concatenate(
        [head(ppi_idx, pghid_ppi, pghid_ppi, 1),
         head(ppi_idx, p_share, p_share, 4)], axis=1)
    ddi_sig_ref[...] = jnp.concatenate(
        [head(ddi_idx, dghid_ddi, dghid_ddi, 2),
         head(ddi_idx, d_share, d_share, 5)], axis=1)


# ---------------------------------------------------------------------------
# Parameters (same distributions as AdvMPDP.init_parameters, batched layout)
# ---------------------------------------------------------------------------
def init_params(key, n_prot, n_drug, hidden_dim, seq_emb_dim):
    y = 1.0 / math.sqrt(seq_emb_dim)
    y2 = 1.0 / math.sqrt(hidden_dim)
    ks = jax.random.split(key, 5)
    H = hidden_dim

    def u(k, shape, lim):
        return jax.random.uniform(k, shape, jnp.float32, minval=-lim, maxval=lim)

    return {
        "pemb": u(ks[0], (n_prot, seq_emb_dim), y),
        "demb": u(ks[1], (n_drug, seq_emb_dim), y),
        # protein projections, columns: [0:H)=ppi, [H:2H)=dti, [2H:3H)=share
        "pproj_w": u(ks[2], (seq_emb_dim, 3 * H), y),
        "pproj_b": jnp.zeros((1, 3 * H), jnp.float32),
        # drug projections, columns: [0:H)=ddi, [H:2H)=dti, [2H:3H)=share
        "dproj_w": u(ks[3], (seq_emb_dim, 3 * H), y),
        "dproj_b": jnp.zeros((1, 3 * H), jnp.float32),
        # classifier heads: 0=dti, 1=ppi, 2=ddi, 3=dti_share, 4=ppi_share, 5=ddi_share
        "clf_w": u(ks[4], (6, H), y2),
        "clf_b": jnp.zeros((6,), jnp.float32),
    }


# ---------------------------------------------------------------------------
# Forward pass (single pallas_call)
# ---------------------------------------------------------------------------
def advmpdp_forward(params, pindex, dindex, dti_pairs, ppi_pairs, ddi_pairs):
    H = params["clf_w"].shape[1]
    E = params["pemb"].shape[1]

    # embedding lookup in XLA, cast matmul operands to bf16 (f32 accumulation in-kernel)
    pemb = jnp.take(params["pemb"], pindex, axis=0).astype(jnp.bfloat16)
    demb = jnp.take(params["demb"], dindex, axis=0).astype(jnp.bfloat16)
    wp = params["pproj_w"].astype(jnp.bfloat16)
    wd = params["dproj_w"].astype(jnp.bfloat16)

    Np, Nd = pemb.shape[0], demb.shape[0]
    Pd, Pp, Px = dti_pairs.shape[0], ppi_pairs.shape[0], ddi_pairs.shape[0]

    def full(shape):
        return pl.BlockSpec(shape, lambda i: (0,) * len(shape))

    out_shape = (
        jax.ShapeDtypeStruct((2 * Np, H), jnp.float32),   # pghid_ppi
        jax.ShapeDtypeStruct((2 * Np, H), jnp.float32),   # pghid_dti
        jax.ShapeDtypeStruct((2 * Nd, H), jnp.float32),   # dghid_ddi
        jax.ShapeDtypeStruct((2 * Nd, H), jnp.float32),   # dghid_dti
        jax.ShapeDtypeStruct((Pd, 2), jnp.float32),       # [dti, dti_share]
        jax.ShapeDtypeStruct((Pp, 2), jnp.float32),       # [ppi, ppi_share]
        jax.ShapeDtypeStruct((Px, 2), jnp.float32),       # [ddi, ddi_share]
    )

    # advisory cost estimate for XLA scheduling
    gather_flops = 2 * H * (Pd * (2 * Nd + 2 * Np) + 2 * Pd * Np
                            + Pp * (4 * Np) + 2 * Pp * Np
                            + Px * (4 * Nd) + 2 * Px * Nd)
    flops = 2 * (Np + Nd) * E * 3 * H + gather_flops + 4 * H * (Pd + Pp + Px)
    ins = (pemb, demb, wp, params["pproj_b"], wd, params["dproj_b"],
           params["clf_w"], params["clf_b"], dti_pairs, ppi_pairs, ddi_pairs)
    bytes_accessed = int(sum(a.size * a.dtype.itemsize for a in ins)
                         + sum(math.prod(s.shape) * 4 for s in out_shape))
    cost = pl.CostEstimate(flops=int(flops),
                           transcendentals=int(2 * (Pd + Pp + Px)),
                           bytes_accessed=bytes_accessed)

    # NOTE: at toy sizes everything fits one VMEM block; for large N/P this would
    # get a row-tiled grid with dimension_semantics=("parallel",) and a v7x-aware
    # (<=64 MiB) VMEM budget.
    outs = pl.pallas_call(
        _advmpdp_fused_kernel,
        out_shape=out_shape,
        grid=(1,),
        in_specs=[
            full((Np, E)), full((Nd, E)),
            full((E, 3 * H)), full((1, 3 * H)),
            full((E, 3 * H)), full((1, 3 * H)),
            full((6, H)),
            pl.BlockSpec(memory_space=pltpu.MemorySpace.SMEM),   # (6,) head biases
            full((Pd, 2)), full((Pp, 2)), full((Px, 2)),
        ],
        out_specs=[
            full((2 * Np, H)), full((2 * Np, H)),
            full((2 * Nd, H)), full((2 * Nd, H)),
            full((Pd, 2)), full((Pp, 2)), full((Px, 2)),
        ],
        compiler_params=pltpu.CompilerParams(dimension_semantics=("arbitrary",)),
        cost_estimate=cost,
    )(pemb, demb, wp, params["pproj_b"], wd, params["dproj_b"],
      params["clf_w"], params["clf_b"],
      dti_pairs.astype(jnp.int32), ppi_pairs.astype(jnp.int32),
      ddi_pairs.astype(jnp.int32))

    (pghid_ppi, pghid_dti, dghid_ddi, dghid_dti,
     dti_sig, ppi_sig, ddi_sig) = outs

    return (dti_sig[:, 0], ppi_sig[:, 0], ddi_sig[:, 0],
            dti_sig[:, 1], ppi_sig[:, 1], ddi_sig[:, 1],
            pghid_ppi, pghid_dti, dghid_ddi, dghid_dti)


# ---------------------------------------------------------------------------
# Pure-JAX f32 reference (same interpretation of the module)
# ---------------------------------------------------------------------------
def reference_forward(params, pindex, dindex, dti_pairs, ppi_pairs, ddi_pairs):
    H = params["clf_w"].shape[1]
    pemb = params["pemb"][pindex]
    demb = params["demb"][dindex]
    hp = jnp.maximum(pemb @ params["pproj_w"] + params["pproj_b"], 0.0)
    hd = jnp.maximum(demb @ params["dproj_w"] + params["dproj_b"], 0.0)
    p_share, d_share = hp[:, 2 * H:], hd[:, 2 * H:]
    pghid_ppi = jnp.concatenate([hp[:, :H], p_share], axis=0)
    pghid_dti = jnp.concatenate([hp[:, H:2 * H], p_share], axis=0)
    dghid_ddi = jnp.concatenate([hd[:, :H], d_share], axis=0)
    dghid_dti = jnp.concatenate([hd[:, H:2 * H], d_share], axis=0)

    def clf(a, b, k):
        return jax.nn.sigmoid(jnp.sum(a * b * params["clf_w"][k], axis=-1)
                              + params["clf_b"][k])

    dti = clf(dghid_dti[dti_pairs[:, 0]], pghid_dti[dti_pairs[:, 1]], 0)
    ppi = clf(pghid_ppi[ppi_pairs[:, 0]], pghid_ppi[ppi_pairs[:, 1]], 1)
    ddi = clf(dghid_ddi[ddi_pairs[:, 0]], dghid_ddi[ddi_pairs[:, 1]], 2)
    dti_s = clf(p_share[dti_pairs[:, 0]], p_share[dti_pairs[:, 1]], 3)
    ppi_s = clf(p_share[ppi_pairs[:, 0]], p_share[ppi_pairs[:, 1]], 4)
    ddi_s = clf(d_share[ddi_pairs[:, 0]], d_share[ddi_pairs[:, 1]], 5)
    return (dti, ppi, ddi, dti_s, ppi_s, ddi_s,
            pghid_ppi, pghid_dti, dghid_ddi, dghid_dti)


# ---------------------------------------------------------------------------
# Main
# ---------------------------------------------------------------------------
if __name__ == "__main__":
    n_prot, n_drug = 8, 8
    hidden_dim, seq_emb_dim = 32, 64
    n_pairs = 8

    root = jax.random.PRNGKey(0)
    k_params, k_dti, k_ppi, k_ddi = jax.random.split(root, 4)

    params = init_params(k_params, n_prot, n_drug, hidden_dim, seq_emb_dim)

    pindex = jnp.arange(n_prot, dtype=jnp.int32)
    dindex = jnp.arange(n_drug, dtype=jnp.int32)
    # indices kept in [0, n_prot) so the *_share gathers (as written in the source
    # module) stay in range.
    dti_pairs = jax.random.randint(k_dti, (n_pairs, 2), 0, n_prot, dtype=jnp.int32)
    ppi_pairs = jax.random.randint(k_ppi, (n_pairs, 2), 0, n_prot, dtype=jnp.int32)
    ddi_pairs = jax.random.randint(k_ddi, (n_pairs, 2), 0, n_drug, dtype=jnp.int32)

    fwd = jax.jit(advmpdp_forward)
    outs = jax.block_until_ready(
        fwd(params, pindex, dindex, dti_pairs, ppi_pairs, ddi_pairs))

    # shape sanity
    assert outs[0].shape == (n_pairs,)
    assert outs[6].shape == (2 * n_prot, hidden_dim)
    assert outs[8].shape == (2 * n_drug, hidden_dim)

    # numeric sanity vs pure-JAX f32 reference (bf16 matmul inputs -> loose tolerance)
    ref = reference_forward(params, pindex, dindex, dti_pairs, ppi_pairs, ddi_pairs)
    for got, want in zip(outs, ref):
        err = float(jnp.max(jnp.abs(got - jnp.asarray(want, jnp.float32))))
        assert err < 3e-2, f"kernel/reference mismatch: max abs err = {err}"

    print("KERNEL_OK")
</pallas_src>

<mosaic_0001>
module attributes {stable_mosaic.version = 11 : i64} {
  func.func @_advmpdp_fused_kernel(%arg0: i32, %arg1: memref<8x64xbf16, #tpu.memory_space<vmem>>, %arg2: memref<8x64xbf16, #tpu.memory_space<vmem>>, %arg3: memref<64x96xbf16, #tpu.memory_space<vmem>>, %arg4: memref<1x96xf32, #tpu.memory_space<vmem>>, %arg5: memref<64x96xbf16, #tpu.memory_space<vmem>>, %arg6: memref<1x96xf32, #tpu.memory_space<vmem>>, %arg7: memref<6x32xf32, #tpu.memory_space<vmem>>, %arg8: memref<6xf32, #tpu.memory_space<smem>>, %arg9: memref<8x2xi32, #tpu.memory_space<vmem>>, %arg10: memref<8x2xi32, #tpu.memory_space<vmem>>, %arg11: memref<8x2xi32, #tpu.memory_space<vmem>>, %arg12: memref<16x32xf32, #tpu.memory_space<vmem>>, %arg13: memref<16x32xf32, #tpu.memory_space<vmem>>, %arg14: memref<16x32xf32, #tpu.memory_space<vmem>>, %arg15: memref<16x32xf32, #tpu.memory_space<vmem>>, %arg16: memref<8x2xf32, #tpu.memory_space<vmem>>, %arg17: memref<8x2xf32, #tpu.memory_space<vmem>>, %arg18: memref<8x2xf32, #tpu.memory_space<vmem>>) attributes {dimension_semantics = [#tpu.dimension_semantics<arbitrary>], iteration_bounds = array<i64: 1>, scalar_prefetch = 0 : i64, scratch_operands = 0 : i64, tpu.core_type = #tpu.core_type<tc>, window_params = [{pipeline_mode = #tpu.pipeline_mode<synchronous>, transform_indices = @transform_0, window_bounds = array<i64: 8, 64>}, {pipeline_mode = #tpu.pipeline_mode<synchronous>, transform_indices = @transform_1, window_bounds = array<i64: 8, 64>}, {pipeline_mode = #tpu.pipeline_mode<synchronous>, transform_indices = @transform_2, window_bounds = array<i64: 64, 96>}, {pipeline_mode = #tpu.pipeline_mode<synchronous>, transform_indices = @transform_3, window_bounds = array<i64: 1, 96>}, {pipeline_mode = #tpu.pipeline_mode<synchronous>, transform_indices = @transform_4, window_bounds = array<i64: 64, 96>}, {pipeline_mode = #tpu.pipeline_mode<synchronous>, transform_indices = @transform_5, window_bounds = array<i64: 1, 96>}, {pipeline_mode = #tpu.pipeline_mode<synchronous>, transform_indices = @transform_6, window_bounds = array<i64: 6, 32>}, {transform_indices = @transform_7, window_bounds = array<i64: 6>}, {pipeline_mode = #tpu.pipeline_mode<synchronous>, transform_indices = @transform_8, window_bounds = array<i64: 8, 2>}, {pipeline_mode = #tpu.pipeline_mode<synchronous>, transform_indices = @transform_9, window_bounds = array<i64: 8, 2>}, {pipeline_mode = #tpu.pipeline_mode<synchronous>, transform_indices = @transform_10, window_bounds = array<i64: 8, 2>}, {pipeline_mode = #tpu.pipeline_mode<synchronous>, transform_indices = @transform_11, window_bounds = array<i64: 16, 32>}, {pipeline_mode = #tpu.pipeline_mode<synchronous>, transform_indices = @transform_12, window_bounds = array<i64: 16, 32>}, {pipeline_mode = #tpu.pipeline_mode<synchronous>, transform_indices = @transform_13, window_bounds = array<i64: 16, 32>}, {pipeline_mode = #tpu.pipeline_mode<synchronous>, transform_indices = @transform_14, window_bounds = array<i64: 16, 32>}, {pipeline_mode = #tpu.pipeline_mode<synchronous>, transform_indices = @transform_15, window_bounds = array<i64: 8, 2>}, {pipeline_mode = #tpu.pipeline_mode<synchronous>, transform_indices = @transform_16, window_bounds = array<i64: 8, 2>}, {pipeline_mode = #tpu.pipeline_mode<synchronous>, transform_indices = @transform_17, window_bounds = array<i64: 8, 2>}]} {
    %c0 = arith.constant 0 : index
    %c0_0 = arith.constant 0 : index
    %0 = vector.load %arg1[%c0, %c0_0] : memref<8x64xbf16, #tpu.memory_space<vmem>>, vector<8x64xbf16>
    %c0_1 = arith.constant 0 : index
    %c0_2 = arith.constant 0 : index
    %1 = vector.load %arg3[%c0_1, %c0_2] : memref<64x96xbf16, #tpu.memory_space<vmem>>, vector<64x96xbf16>
    %cst = arith.constant dense<0.000000e+00> : vector<8x96xf32>
    %2 = tpu.matmul %0, %1, %cst {dimension_numbers = #tpu.dot_dimension_numbers<[1], [0], [0], [1], [0, 0, 1, 1], [], []>} : vector<8x64xbf16>, vector<64x96xbf16>, vector<8x96xf32> -> vector<8x96xf32>
    %c0_3 = arith.constant 0 : index
    %c0_4 = arith.constant 0 : index
    %3 = vector.load %arg4[%c0_3, %c0_4] : memref<1x96xf32, #tpu.memory_space<vmem>>, vector<1x96xf32>
    %4 = vector.broadcast %3 : vector<1x96xf32> to vector<8x96xf32>
    %5 = arith.addf %2, %4 : vector<8x96xf32>
    %cst_5 = arith.constant 0.000000e+00 : f32
    %6 = vector.broadcast %cst_5 : f32 to vector<8x96xf32>
    %7 = arith.maximumf %5, %6 : vector<8x96xf32>
    %c0_6 = arith.constant 0 : index
    %c0_7 = arith.constant 0 : index
    %8 = vector.load %arg2[%c0_6, %c0_7] : memref<8x64xbf16, #tpu.memory_space<vmem>>, vector<8x64xbf16>
    %c0_8 = arith.constant 0 : index
    %c0_9 = arith.constant 0 : index
    %9 = vector.load %arg5[%c0_8, %c0_9] : memref<64x96xbf16, #tpu.memory_space<vmem>>, vector<64x96xbf16>
    %cst_10 = arith.constant dense<0.000000e+00> : vector<8x96xf32>
    %10 = tpu.matmul %8, %9, %cst_10 {dimension_numbers = #tpu.dot_dimension_numbers<[1], [0], [0], [1], [0, 0, 1, 1], [], []>} : vector<8x64xbf16>, vector<64x96xbf16>, vector<8x96xf32> -> vector<8x96xf32>
    %c0_11 = arith.constant 0 : index
    %c0_12 = arith.constant 0 : index
    %11 = vector.load %arg6[%c0_11, %c0_12] : memref<1x96xf32, #tpu.memory_space<vmem>>, vector<1x96xf32>
    %12 = vector.broadcast %11 : vector<1x96xf32> to vector<8x96xf32>
    %13 = arith.addf %10, %12 : vector<8x96xf32>
    %cst_13 = arith.constant 0.000000e+00 : f32
    %14 = vector.broadcast %cst_13 : f32 to vector<8x96xf32>
    %15 = arith.maximumf %13, %14 : vector<8x96xf32>
    %16 = vector.extract_strided_slice %7 {offsets = [0, 64], sizes = [8, 32], strides = [1, 1]} : vector<8x96xf32> to vector<8x32xf32>
    %17 = vector.extract_strided_slice %15 {offsets = [0, 64], sizes = [8, 32], strides = [1, 1]} : vector<8x96xf32> to vector<8x32xf32>
    %18 = vector.extract_strided_slice %7 {offsets = [0, 0], sizes = [8, 32], strides = [1, 1]} : vector<8x96xf32> to vector<8x32xf32>
    %19 = tpu.concatenate %18, %16 in 0 : vector<8x32xf32>, vector<8x32xf32> -> vector<16x32xf32>
    %20 = vector.extract_strided_slice %7 {offsets = [0, 32], sizes = [8, 32], strides = [1, 1]} : vector<8x96xf32> to vector<8x32xf32>
    %21 = tpu.concatenate %20, %16 in 0 : vector<8x32xf32>, vector<8x32xf32> -> vector<16x32xf32>
    %22 = vector.extract_strided_slice %15 {offsets = [0, 0], sizes = [8, 32], strides = [1, 1]} : vector<8x96xf32> to vector<8x32xf32>
    %23 = tpu.concatenate %22, %17 in 0 : vector<8x32xf32>, vector<8x32xf32> -> vector<16x32xf32>
    %24 = vector.extract_strided_slice %15 {offsets = [0, 32], sizes = [8, 32], strides = [1, 1]} : vector<8x96xf32> to vector<8x32xf32>
    %25 = tpu.concatenate %24, %17 in 0 : vector<8x32xf32>, vector<8x32xf32> -> vector<16x32xf32>
    %c0_14 = arith.constant 0 : index
    %c0_15 = arith.constant 0 : index
    %26 = vector.load %arg12[%c0_14, %c0_15] : memref<16x32xf32, #tpu.memory_space<vmem>>, vector<16x32xf32>
    tpu.vector_store %arg12[%c0_14, %c0_15], %19 {strides = array<i32>} : memref<16x32xf32, #tpu.memory_space<vmem>>, vector<16x32xf32>,
    %c0_16 = arith.constant 0 : index
    %c0_17 = arith.constant 0 : index
    %27 = vector.load %arg13[%c0_16, %c0_17] : memref<16x32xf32, #tpu.memory_space<vmem>>, vector<16x32xf32>
    tpu.vector_store %arg13[%c0_16, %c0_17], %21 {strides = array<i32>} : memref<16x32xf32, #tpu.memory_space<vmem>>, vector<16x32xf32>,
    %c0_18 = arith.constant 0 : index
    %c0_19 = arith.constant 0 : index
    %28 = vector.load %arg14[%c0_18, %c0_19] : memref<16x32xf32, #tpu.memory_space<vmem>>, vector<16x32xf32>
    tpu.vector_store %arg14[%c0_18, %c0_19], %23 {strides = array<i32>} : memref<16x32xf32, #tpu.memory_space<vmem>>, vector<16x32xf32>,
    %c0_20 = arith.constant 0 : index
    %c0_21 = arith.constant 0 : index
    %29 = vector.load %arg15[%c0_20, %c0_21] : memref<16x32xf32, #tpu.memory_space<vmem>>, vector<16x32xf32>
    tpu.vector_store %arg15[%c0_20, %c0_21], %25 {strides = array<i32>} : memref<16x32xf32, #tpu.memory_space<vmem>>, vector<16x32xf32>,
    %c0_22 = arith.constant 0 : index
    %c0_23 = arith.constant 0 : index
    %30 = vector.load %arg9[%c0_22, %c0_23] : memref<8x2xi32, #tpu.memory_space<vmem>>, vector<8x2xi32>
    %c0_24 = arith.constant 0 : index
    %c0_25 = arith.constant 0 : index
    %31 = vector.load %arg10[%c0_24, %c0_25] : memref<8x2xi32, #tpu.memory_space<vmem>>, vector<8x2xi32>
    %c0_26 = arith.constant 0 : index
    %c0_27 = arith.constant 0 : index
    %32 = vector.load %arg11[%c0_26, %c0_27] : memref<8x2xi32, #tpu.memory_space<vmem>>, vector<8x2xi32>
    %33 = vector.extract_strided_slice %30 {offsets = [0, 0], sizes = [8, 1], strides = [1, 1]} : vector<8x2xi32> to vector<8x1xi32>
    %34 = tpu.iota {dimensions = array<i32: 1>} : vector<8x16xi32>
    %35 = vector.broadcast %33 : vector<8x1xi32> to vector<8x16xi32>
    %36 = arith.cmpi eq, %34, %35 : vector<8x16xi32>
    %37 = arith.extui %36 : vector<8x16xi1> to vector<8x16xi32>
    %38 = arith.sitofp %37 : vector<8x16xi32> to vector<8x16xf32>
    %cst_28 = arith.constant dense<0.000000e+00> : vector<8x32xf32>
    %39 = tpu.matmul %38, %25, %cst_28 {dimension_numbers = #tpu.dot_dimension_numbers<[1], [0], [0], [1], [0, 0, 1, 1], [], []>} : vector<8x16xf32>, vector<16x32xf32>, vector<8x32xf32> -> vector<8x32xf32>
    %40 = vector.extract_strided_slice %30 {offsets = [0, 1], sizes = [8, 1], strides = [1, 1]} : vector<8x2xi32> to vector<8x1xi32>
    %41 = tpu.iota {dimensions = array<i32: 1>} : vector<8x16xi32>
    %42 = vector.broadcast %40 : vector<8x1xi32> to vector<8x16xi32>
    %43 = arith.cmpi eq, %41, %42 : vector<8x16xi32>
    %44 = arith.extui %43 : vector<8x16xi1> to vector<8x16xi32>
    %45 = arith.sitofp %44 : vector<8x16xi32> to vector<8x16xf32>
    %cst_29 = arith.constant dense<0.000000e+00> : vector<8x32xf32>
    %46 = tpu.matmul %45, %21, %cst_29 {dimension_numbers = #tpu.dot_dimension_numbers<[1], [0], [0], [1], [0, 0, 1, 1], [], []>} : vector<8x16xf32>, vector<16x32xf32>, vector<8x32xf32> -> vector<8x32xf32>
    %c0_30 = arith.constant 0 : index
    %c0_31 = arith.constant 0 : index
    %47 = vector.load %arg7[%c0_30, %c0_31] : memref<6x32xf32, #tpu.memory_space<vmem>>, vector<1x32xf32>
    %48 = arith.mulf %39, %46 : vector<8x32xf32>
    %49 = vector.broadcast %47 : vector<1x32xf32> to vector<8x32xf32>
    %50 = arith.mulf %48, %49 : vector<8x32xf32>
    %cst_32 = arith.constant dense<0.000000e+00> : vector<8xf32>
    %51 = vector.multi_reduction <add>, %50, %cst_32 [1] : vector<8x32xf32> to vector<8xf32>
    %52 = vector.shape_cast %51 : vector<8xf32> to vector<8x1xf32>
    %c0_33 = arith.constant 0 : index
    %53 = memref.load %arg8[%c0_33] : memref<6xf32, #tpu.memory_space<smem>>
    %54 = vector.broadcast %53 : f32 to vector<8x1xf32>
    %55 = arith.addf %52, %54 : vector<8x1xf32>
    %56 = arith.negf %55 : vector<8x1xf32>
    %57 = math.exp %56 : vector<8x1xf32>
    %cst_34 = arith.constant 1.000000e+00 : f32
    %58 = vector.broadcast %cst_34 : f32 to vector<8x1xf32>
    %59 = arith.addf %58, %57 : vector<8x1xf32>
    %60 = arith.divf %58, %59 : vector<8x1xf32>
    %61 = vector.extract_strided_slice %30 {offsets = [0, 0], sizes = [8, 1], strides = [1, 1]} : vector<8x2xi32> to vector<8x1xi32>
    %62 = tpu.iota {dimensions = array<i32: 1>} : vector<8x8xi32>
    %63 = vector.broadcast %61 : vector<8x1xi32> to vector<8x8xi32>
    %64 = arith.cmpi eq, %62, %63 : vector<8x8xi32>
    %65 = arith.extui %64 : vector<8x8xi1> to vector<8x8xi32>
    %66 = arith.sitofp %65 : vector<8x8xi32> to vector<8x8xf32>
    %cst_35 = arith.constant dense<0.000000e+00> : vector<8x32xf32>
    %67 = tpu.matmul %66, %16, %cst_35 {dimension_numbers = #tpu.dot_dimension_numbers<[1], [0], [0], [1], [0, 0, 1, 1], [], []>} : vector<8x8xf32>, vector<8x32xf32>, vector<8x32xf32> -> vector<8x32xf32>
    %68 = vector.extract_strided_slice %30 {offsets = [0, 1], sizes = [8, 1], strides = [1, 1]} : vector<8x2xi32> to vector<8x1xi32>
    %69 = tpu.iota {dimensions = array<i32: 1>} : vector<8x8xi32>
    %70 = vector.broadcast %68 : vector<8x1xi32> to vector<8x8xi32>
    %71 = arith.cmpi eq, %69, %70 : vector<8x8xi32>
    %72 = arith.extui %71 : vector<8x8xi1> to vector<8x8xi32>
    %73 = arith.sitofp %72 : vector<8x8xi32> to vector<8x8xf32>
    %cst_36 = arith.constant dense<0.000000e+00> : vector<8x32xf32>
    %74 = tpu.matmul %73, %16, %cst_36 {dimension_numbers = #tpu.dot_dimension_numbers<[1], [0], [0], [1], [0, 0, 1, 1], [], []>} : vector<8x8xf32>, vector<8x32xf32>, vector<8x32xf32> -> vector<8x32xf32>
    %c3 = arith.constant 3 : index
    %c0_37 = arith.constant 0 : index
    %75 = vector.load %arg7[%c3, %c0_37] : memref<6x32xf32, #tpu.memory_space<vmem>>, vector<1x32xf32>
    %76 = arith.mulf %67, %74 : vector<8x32xf32>
    %77 = vector.broadcast %75 : vector<1x32xf32> to vector<8x32xf32>
    %78 = arith.mulf %76, %77 : vector<8x32xf32>
    %cst_38 = arith.constant dense<0.000000e+00> : vector<8xf32>
    %79 = vector.multi_reduction <add>, %78, %cst_38 [1] : vector<8x32xf32> to vector<8xf32>
    %80 = vector.shape_cast %79 : vector<8xf32> to vector<8x1xf32>
    %c3_39 = arith.constant 3 : index
    %81 = memref.load %arg8[%c3_39] : memref<6xf32, #tpu.memory_space<smem>>
    %82 = vector.broadcast %81 : f32 to vector<8x1xf32>
    %83 = arith.addf %80, %82 : vector<8x1xf32>
    %84 = arith.negf %83 : vector<8x1xf32>
    %85 = math.exp %84 : vector<8x1xf32>
    %cst_40 = arith.constant 1.000000e+00 : f32
    %86 = vector.broadcast %cst_40 : f32 to vector<8x1xf32>
    %87 = arith.addf %86, %85 : vector<8x1xf32>
    %88 = arith.divf %86, %87 : vector<8x1xf32>
    %89 = tpu.concatenate %60, %88 in 1 : vector<8x1xf32>, vector<8x1xf32> -> vector<8x2xf32>
    %c0_41 = arith.constant 0 : index
    %c0_42 = arith.constant 0 : index
    %90 = vector.load %arg16[%c0_41, %c0_42] : memref<8x2xf32, #tpu.memory_space<vmem>>, vector<8x2xf32>
    tpu.vector_store %arg16[%c0_41, %c0_42], %89 {strides = array<i32>} : memref<8x2xf32, #tpu.memory_space<vmem>>, vector<8x2xf32>,
    %91 = vector.extract_strided_slice %31 {offsets = [0, 0], sizes = [8, 1], strides = [1, 1]} : vector<8x2xi32> to vector<8x1xi32>
    %92 = tpu.iota {dimensions = array<i32: 1>} : vector<8x16xi32>
    %93 = vector.broadcast %91 : vector<8x1xi32> to vector<8x16xi32>
    %94 = arith.cmpi eq, %92, %93 : vector<8x16xi32>
    %95 = arith.extui %94 : vector<8x16xi1> to vector<8x16xi32>
    %96 = arith.sitofp %95 : vector<8x16xi32> to vector<8x16xf32>
    %cst_43 = arith.constant dense<0.000000e+00> : vector<8x32xf32>
    %97 = tpu.matmul %96, %19, %cst_43 {dimension_numbers = #tpu.dot_dimension_numbers<[1], [0], [0], [1], [0, 0, 1, 1], [], []>} : vector<8x16xf32>, vector<16x32xf32>, vector<8x32xf32> -> vector<8x32xf32>
    %98 = vector.extract_strided_slice %31 {offsets = [0, 1], sizes = [8, 1], strides = [1, 1]} : vector<8x2xi32> to vector<8x1xi32>
    %99 = tpu.iota {dimensions = array<i32: 1>} : vector<8x16xi32>
    %100 = vector.broadcast %98 : vector<8x1xi32> to vector<8x16xi32>
    %101 = arith.cmpi eq, %99, %100 : vector<8x16xi32>
    %102 = arith.extui %101 : vector<8x16xi1> to vector<8x16xi32>
    %103 = arith.sitofp %102 : vector<8x16xi32> to vector<8x16xf32>
    %cst_44 = arith.constant dense<0.000000e+00> : vector<8x32xf32>
    %104 = tpu.matmul %103, %19, %cst_44 {dimension_numbers = #tpu.dot_dimension_numbers<[1], [0], [0], [1], [0, 0, 1, 1], [], []>} : vector<8x16xf32>, vector<16x32xf32>, vector<8x32xf32> -> vector<8x32xf32>
    %c1 = arith.constant 1 : index
    %c0_45 = arith.constant 0 : index
    %105 = vector.load %arg7[%c1, %c0_45] : memref<6x32xf32, #tpu.memory_space<vmem>>, vector<1x32xf32>
    %106 = arith.mulf %97, %104 : vector<8x32xf32>
    %107 = vector.broadcast %105 : vector<1x32xf32> to vector<8x32xf32>
    %108 = arith.mulf %106, %107 : vector<8x32xf32>
    %cst_46 = arith.constant dense<0.000000e+00> : vector<8xf32>
    %109 = vector.multi_reduction <add>, %108, %cst_46 [1] : vector<8x32xf32> to vector<8xf32>
    %110 = vector.shape_cast %109 : vector<8xf32> to vector<8x1xf32>
    %c1_47 = arith.constant 1 : index
    %111 = memref.load %arg8[%c1_47] : memref<6xf32, #tpu.memory_space<smem>>
    %112 = vector.broadcast %111 : f32 to vector<8x1xf32>
    %113 = arith.addf %110, %112 : vector<8x1xf32>
    %114 = arith.negf %113 : vector<8x1xf32>
    %115 = math.exp %114 : vector<8x1xf32>
    %cst_48 = arith.constant 1.000000e+00 : f32
    %116 = vector.broadcast %cst_48 : f32 to vector<8x1xf32>
    %117 = arith.addf %116, %115 : vector<8x1xf32>
    %118 = arith.divf %116, %117 : vector<8x1xf32>
    %119 = vector.extract_strided_slice %31 {offsets = [0, 0], sizes = [8, 1], strides = [1, 1]} : vector<8x2xi32> to vector<8x1xi32>
    %120 = tpu.iota {dimensions = array<i32: 1>} : vector<8x8xi32>
    %121 = vector.broadcast %119 : vector<8x1xi32> to vector<8x8xi32>
    %122 = arith.cmpi eq, %120, %121 : vector<8x8xi32>
    %123 = arith.extui %122 : vector<8x8xi1> to vector<8x8xi32>
    %124 = arith.sitofp %123 : vector<8x8xi32> to vector<8x8xf32>
    %cst_49 = arith.constant dense<0.000000e+00> : vector<8x32xf32>
    %125 = tpu.matmul %124, %16, %cst_49 {dimension_numbers = #tpu.dot_dimension_numbers<[1], [0], [0], [1], [0, 0, 1, 1], [], []>} : vector<8x8xf32>, vector<8x32xf32>, vector<8x32xf32> -> vector<8x32xf32>
    %126 = vector.extract_strided_slice %31 {offsets = [0, 1], sizes = [8, 1], strides = [1, 1]} : vector<8x2xi32> to vector<8x1xi32>
    %127 = tpu.iota {dimensions = array<i32: 1>} : vector<8x8xi32>
    %128 = vector.broadcast %126 : vector<8x1xi32> to vector<8x8xi32>
    %129 = arith.cmpi eq, %127, %128 : vector<8x8xi32>
    %130 = arith.extui %129 : vector<8x8xi1> to vector<8x8xi32>
    %131 = arith.sitofp %130 : vector<8x8xi32> to vector<8x8xf32>
    %cst_50 = arith.constant dense<0.000000e+00> : vector<8x32xf32>
    %132 = tpu.matmul %131, %16, %cst_50 {dimension_numbers = #tpu.dot_dimension_numbers<[1], [0], [0], [1], [0, 0, 1, 1], [], []>} : vector<8x8xf32>, vector<8x32xf32>, vector<8x32xf32> -> vector<8x32xf32>
    %c4 = arith.constant 4 : index
    %c0_51 = arith.constant 0 : index
    %133 = vector.load %arg7[%c4, %c0_51] : memref<6x32xf32, #tpu.memory_space<vmem>>, vector<1x32xf32>
    %134 = arith.mulf %125, %132 : vector<8x32xf32>
    %135 = vector.broadcast %133 : vector<1x32xf32> to vector<8x32xf32>
    %136 = arith.mulf %134, %135 : vector<8x32xf32>
    %cst_52 = arith.constant dense<0.000000e+00> : vector<8xf32>
    %137 = vector.multi_reduction <add>, %136, %cst_52 [1] : vector<8x32xf32> to vector<8xf32>
    %138 = vector.shape_cast %137 : vector<8xf32> to vector<8x1xf32>
    %c4_53 = arith.constant 4 : index
    %139 = memref.load %arg8[%c4_53] : memref<6xf32, #tpu.memory_space<smem>>
    %140 = vector.broadcast %139 : f32 to vector<8x1xf32>
    %141 = arith.addf %138, %140 : vector<8x1xf32>
    %142 = arith.negf %141 : vector<8x1xf32>
    %143 = math.exp %142 : vector<8x1xf32>
    %cst_54 = arith.constant 1.000000e+00 : f32
    %144 = vector.broadcast %cst_54 : f32 to vector<8x1xf32>
    %145 = arith.addf %144, %143 : vector<8x1xf32>
    %146 = arith.divf %144, %145 : vector<8x1xf32>
    %147 = tpu.concatenate %118, %146 in 1 : vector<8x1xf32>, vector<8x1xf32> -> vector<8x2xf32>
    %c0_55 = arith.constant 0 : index
    %c0_56 = arith.constant 0 : index
    %148 = vector.load %arg17[%c0_55, %c0_56] : memref<8x2xf32, #tpu.memory_space<vmem>>, vector<8x2xf32>
    tpu.vector_store %arg17[%c0_55, %c0_56], %147 {strides = array<i32>} : memref<8x2xf32, #tpu.memory_space<vmem>>, vector<8x2xf32>,
    %149 = vector.extract_strided_slice %32 {offsets = [0, 0], sizes = [8, 1], strides = [1, 1]} : vector<8x2xi32> to vector<8x1xi32>
    %150 = tpu.iota {dimensions = array<i32: 1>} : vector<8x16xi32>
    %151 = vector.broadcast %149 : vector<8x1xi32> to vector<8x16xi32>
    %152 = arith.cmpi eq, %150, %151 : vector<8x16xi32>
    %153 = arith.extui %152 : vector<8x16xi1> to vector<8x16xi32>
    %154 = arith.sitofp %153 : vector<8x16xi32> to vector<8x16xf32>
    %cst_57 = arith.constant dense<0.000000e+00> : vector<8x32xf32>
    %155 = tpu.matmul %154, %23, %cst_57 {dimension_numbers = #tpu.dot_dimension_numbers<[1], [0], [0], [1], [0, 0, 1, 1], [], []>} : vector<8x16xf32>, vector<16x32xf32>, vector<8x32xf32> -> vector<8x32xf32>
    %156 = vector.extract_strided_slice %32 {offsets = [0, 1], sizes = [8, 1], strides = [1, 1]} : vector<8x2xi32> to vector<8x1xi32>
    %157 = tpu.iota {dimensions = array<i32: 1>} : vector<8x16xi32>
    %158 = vector.broadcast %156 : vector<8x1xi32> to vector<8x16xi32>
    %159 = arith.cmpi eq, %157, %158 : vector<8x16xi32>
    %160 = arith.extui %159 : vector<8x16xi1> to vector<8x16xi32>
    %161 = arith.sitofp %160 : vector<8x16xi32> to vector<8x16xf32>
    %cst_58 = arith.constant dense<0.000000e+00> : vector<8x32xf32>
    %162 = tpu.matmul %161, %23, %cst_58 {dimension_numbers = #tpu.dot_dimension_numbers<[1], [0], [0], [1], [0, 0, 1, 1], [], []>} : vector<8x16xf32>, vector<16x32xf32>, vector<8x32xf32> -> vector<8x32xf32>
    %c2 = arith.constant 2 : index
    %c0_59 = arith.constant 0 : index
    %163 = vector.load %arg7[%c2, %c0_59] : memref<6x32xf32, #tpu.memory_space<vmem>>, vector<1x32xf32>
    %164 = arith.mulf %155, %162 : vector<8x32xf32>
    %165 = vector.broadcast %163 : vector<1x32xf32> to vector<8x32xf32>
    %166 = arith.mulf %164, %165 : vector<8x32xf32>
    %cst_60 = arith.constant dense<0.000000e+00> : vector<8xf32>
    %167 = vector.multi_reduction <add>, %166, %cst_60 [1] : vector<8x32xf32> to vector<8xf32>
    %168 = vector.shape_cast %167 : vector<8xf32> to vector<8x1xf32>
    %c2_61 = arith.constant 2 : index
    %169 = memref.load %arg8[%c2_61] : memref<6xf32, #tpu.memory_space<smem>>
    %170 = vector.broadcast %169 : f32 to vector<8x1xf32>
    %171 = arith.addf %168, %170 : vector<8x1xf32>
    %172 = arith.negf %171 : vector<8x1xf32>
    %173 = math.exp %172 : vector<8x1xf32>
    %cst_62 = arith.constant 1.000000e+00 : f32
    %174 = vector.broadcast %cst_62 : f32 to vector<8x1xf32>
    %175 = arith.addf %174, %173 : vector<8x1xf32>
    %176 = arith.divf %174, %175 : vector<8x1xf32>
    %177 = vector.extract_strided_slice %32 {offsets = [0, 0], sizes = [8, 1], strides = [1, 1]} : vector<8x2xi32> to vector<8x1xi32>
    %178 = tpu.iota {dimensions = array<i32: 1>} : vector<8x8xi32>
    %179 = vector.broadcast %177 : vector<8x1xi32> to vector<8x8xi32>
    %180 = arith.cmpi eq, %178, %179 : vector<8x8xi32>
    %181 = arith.extui %180 : vector<8x8xi1> to vector<8x8xi32>
    %182 = arith.sitofp %181 : vector<8x8xi32> to vector<8x8xf32>
    %cst_63 = arith.constant dense<0.000000e+00> : vector<8x32xf32>
    %183 = tpu.matmul %182, %17, %cst_63 {dimension_numbers = #tpu.dot_dimension_numbers<[1], [0], [0], [1], [0, 0, 1, 1], [], []>} : vector<8x8xf32>, vector<8x32xf32>, vector<8x32xf32> -> vector<8x32xf32>
    %184 = vector.extract_strided_slice %32 {offsets = [0, 1], sizes = [8, 1], strides = [1, 1]} : vector<8x2xi32> to vector<8x1xi32>
    %185 = tpu.iota {dimensions = array<i32: 1>} : vector<8x8xi32>
    %186 = vector.broadcast %184 : vector<8x1xi32> to vector<8x8xi32>
    %187 = arith.cmpi eq, %185, %186 : vector<8x8xi32>
    %188 = arith.extui %187 : vector<8x8xi1> to vector<8x8xi32>
    %189 = arith.sitofp %188 : vector<8x8xi32> to vector<8x8xf32>
    %cst_64 = arith.constant dense<0.000000e+00> : vector<8x32xf32>
    %190 = tpu.matmul %189, %17, %cst_64 {dimension_numbers = #tpu.dot_dimension_numbers<[1], [0], [0], [1], [0, 0, 1, 1], [], []>} : vector<8x8xf32>, vector<8x32xf32>, vector<8x32xf32> -> vector<8x32xf32>
    %c5 = arith.constant 5 : index
    %c0_65 = arith.constant 0 : index
    %191 = vector.load %arg7[%c5, %c0_65] : memref<6x32xf32, #tpu.memory_space<vmem>>, vector<1x32xf32>
    %192 = arith.mulf %183, %190 : vector<8x32xf32>
    %193 = vector.broadcast %191 : vector<1x32xf32> to vector<8x32xf32>
    %194 = arith.mulf %192, %193 : vector<8x32xf32>
    %cst_66 = arith.constant dense<0.000000e+00> : vector<8xf32>
    %195 = vector.multi_reduction <add>, %194, %cst_66 [1] : vector<8x32xf32> to vector<8xf32>
    %196 = vector.shape_cast %195 : vector<8xf32> to vector<8x1xf32>
    %c5_67 = arith.constant 5 : index
    %197 = memref.load %arg8[%c5_67] : memref<6xf32, #tpu.memory_space<smem>>
    %198 = vector.broadcast %197 : f32 to vector<8x1xf32>
    %199 = arith.addf %196, %198 : vector<8x1xf32>
    %200 = arith.negf %199 : vector<8x1xf32>
    %201 = math.exp %200 : vector<8x1xf32>
    %cst_68 = arith.constant 1.000000e+00 : f32
    %202 = vector.broadcast %cst_68 : f32 to vector<8x1xf32>
    %203 = arith.addf %202, %201 : vector<8x1xf32>
    %204 = arith.divf %202, %203 : vector<8x1xf32>
    %205 = tpu.concatenate %176, %204 in 1 : vector<8x1xf32>, vector<8x1xf32> -> vector<8x2xf32>
    %c0_69 = arith.constant 0 : index
    %c0_70 = arith.constant 0 : index
    %206 = vector.load %arg18[%c0_69, %c0_70] : memref<8x2xf32, #tpu.memory_space<vmem>>, vector<8x2xf32>
    tpu.vector_store %arg18[%c0_69, %c0_70], %205 {strides = array<i32>} : memref<8x2xf32, #tpu.memory_space<vmem>>, vector<8x2xf32>,
    return
  }
  func.func @transform_0(%arg0: i32) -> (i32, i32) {
    %c0_i32 = arith.constant 0 : i32
    %c0_i32_0 = arith.constant 0 : i32
    %c0_i32_1 = arith.constant 0 : i32
    return %c0_i32, %c0_i32_0 : i32, i32
  }
  func.func @transform_1(%arg0: i32) -> (i32, i32) {
    %c0_i32 = arith.constant 0 : i32
    %c0_i32_0 = arith.constant 0 : i32
    %c0_i32_1 = arith.constant 0 : i32
    return %c0_i32, %c0_i32_0 : i32, i32
  }
  func.func @transform_2(%arg0: i32) -> (i32, i32) {
    %c0_i32 = arith.constant 0 : i32
    %c0_i32_0 = arith.constant 0 : i32
    %c0_i32_1 = arith.constant 0 : i32
    return %c0_i32, %c0_i32_0 : i32, i32
  }
  func.func @transform_3(%arg0: i32) -> (i32, i32) {
    %c0_i32 = arith.constant 0 : i32
    %c0_i32_0 = arith.constant 0 : i32
    %c0_i32_1 = arith.constant 0 : i32
    return %c0_i32, %c0_i32_0 : i32, i32
  }
  func.func @transform_4(%arg0: i32) -> (i32, i32) {
    %c0_i32 = arith.constant 0 : i32
    %c0_i32_0 = arith.constant 0 : i32
    %c0_i32_1 = arith.constant 0 : i32
    return %c0_i32, %c0_i32_0 : i32, i32
  }
  func.func @transform_5(%arg0: i32) -> (i32, i32) {
    %c0_i32 = arith.constant 0 : i32
    %c0_i32_0 = arith.constant 0 : i32
    %c0_i32_1 = arith.constant 0 : i32
    return %c0_i32, %c0_i32_0 : i32, i32
  }
  func.func @transform_6(%arg0: i32) -> (i32, i32) {
    %c0_i32 = arith.constant 0 : i32
    %c0_i32_0 = arith.constant 0 : i32
    %c0_i32_1 = arith.constant 0 : i32
    return %c0_i32, %c0_i32_0 : i32, i32
  }
  func.func @transform_7(%arg0: i32) -> i32 {
    %c0_i32 = arith.constant 0 : i32
    %c0_i32_0 = arith.constant 0 : i32
    return %c0_i32 : i32
  }
  func.func @transform_8(%arg0: i32) -> (i32, i32) {
    %c0_i32 = arith.constant 0 : i32
    %c0_i32_0 = arith.constant 0 : i32
    %c0_i32_1 = arith.constant 0 : i32
    return %c0_i32, %c0_i32_0 : i32, i32
  }
  func.func @transform_9(%arg0: i32) -> (i32, i32) {
    %c0_i32 = arith.constant 0 : i32
    %c0_i32_0 = arith.constant 0 : i32
    %c0_i32_1 = arith.constant 0 : i32
    return %c0_i32, %c0_i32_0 : i32, i32
  }
  func.func @transform_10(%arg0: i32) -> (i32, i32) {
    %c0_i32 = arith.constant 0 : i32
    %c0_i32_0 = arith.constant 0 : i32
    %c0_i32_1 = arith.constant 0 : i32
    return %c0_i32, %c0_i32_0 : i32, i32
  }
  func.func @transform_11(%arg0: i32) -> (i32, i32) {
    %c0_i32 = arith.constant 0 : i32
    %c0_i32_0 = arith.constant 0 : i32
    %c0_i32_1 = arith.constant 0 : i32
    return %c0_i32, %c0_i32_0 : i32, i32
  }
  func.func @transform_12(%arg0: i32) -> (i32, i32) {
    %c0_i32 = arith.constant 0 : i32
    %c0_i32_0 = arith.constant 0 : i32
    %c0_i32_1 = arith.constant 0 : i32
    return %c0_i32, %c0_i32_0 : i32, i32
  }
  func.func @transform_13(%arg0: i32) -> (i32, i32) {
    %c0_i32 = arith.constant 0 : i32
    %c0_i32_0 = arith.constant 0 : i32
    %c0_i32_1 = arith.constant 0 : i32
    return %c0_i32, %c0_i32_0 : i32, i32
  }
  func.func @transform_14(%arg0: i32) -> (i32, i32) {
    %c0_i32 = arith.constant 0 : i32
    %c0_i32_0 = arith.constant 0 : i32
    %c0_i32_1 = arith.constant 0 : i32
    return %c0_i32, %c0_i32_0 : i32, i32
  }
  func.func @transform_15(%arg0: i32) -> (i32, i32) {
    %c0_i32 = arith.constant 0 : i32
    %c0_i32_0 = arith.constant 0 : i32
    %c0_i32_1 = arith.constant 0 : i32
    return %c0_i32, %c0_i32_0 : i32, i32
  }
  func.func @transform_16(%arg0: i32) -> (i32, i32) {
    %c0_i32 = arith.constant 0 : i32
    %c0_i32_0 = arith.constant 0 : i32
    %c0_i32_1 = arith.constant 0 : i32
    return %c0_i32, %c0_i32_0 : i32, i32
  }
  func.func @transform_17(%arg0: i32) -> (i32, i32) {
    %c0_i32 = arith.constant 0 : i32
    %c0_i32_0 = arith.constant 0 : i32
    %c0_i32_1 = arith.constant 0 : i32
    return %c0_i32, %c0_i32_0 : i32, i32
  }
}

</mosaic_0001>

<bundles_post_ra>
// kernel: advmpdp_forward.1
= control target key start
LH: loop header
LB: loop body
LE: loop exit
PB: predicated region body
PF: predicated region fallthrough
CT: control target
= control target key end

     0   :  { %s2019_s0 = inlined_call_operand.vmem [shape: bf16[8,64], index: 0, kind: input, shape index: {}]   ;;  %s2020_s1 = inlined_call_operand.vmem [shape: bf16[8,64], index: 1, kind: input, shape index: {}]   ;;  %s2021_s2 = inlined_call_operand.vmem [shape: bf16[64,96], index: 2, kind: input, shape index: {}]   ;;  %s2022_s3 = inlined_call_operand.vmem [shape: f32[1,96], index: 3, kind: input, shape index: {}]   ;;  %s2023_s4 = inlined_call_operand.vmem [shape: bf16[64,96], index: 4, kind: input, shape index: {}]   ;;  %s2024_s5 = inlined_call_operand.vmem [shape: f32[1,96], index: 5, kind: input, shape index: {}]   ;;  %s2025_s6 = inlined_call_operand.vmem [shape: f32[6,32], index: 6, kind: input, shape index: {}]   ;;  %s2026_s7 = inlined_call_operand.vmem [shape: f32[6], index: 7, kind: input, shape index: {}]   ;;  %s2027_s8 = inlined_call_operand.vmem [shape: s32[8,2], index: 8, kind: input, shape index: {}]   ;;  %s2028_s9 = inlined_call_operand.vmem [shape: s32[8,2], index: 9, kind: input, shape index: {}]   ;;  %s2029_s10 = inlined_call_operand.vmem [shape: s32[8,2], index: 10, kind: input, shape index: {}]   ;;  %s2030_s11 = inlined_call_operand.hbm [shape: f32[16,32], index: 11, kind: output, shape index: {0}]   ;;  %s2031_s12 = inlined_call_operand.hbm [shape: f32[16,32], index: 12, kind: output, shape index: {1}]   ;;  %s2032_s13 = inlined_call_operand.hbm [shape: f32[16,32], index: 13, kind: output, shape index: {2}]   ;;  %s2033_s14 = inlined_call_operand.hbm [shape: f32[16,32], index: 14, kind: output, shape index: {3}]   ;;  %s2034_s15 = inlined_call_operand.vmem [shape: f32[8,2], index: 15, kind: output, shape index: {4}]   ;;  %s2035_s16 = inlined_call_operand.vmem [shape: f32[8,2], index: 16, kind: output, shape index: {5}]   ;;  %s2036_s17 = inlined_call_operand.vmem [shape: f32[8,2], index: 17, kind: output, shape index: {6}]  }
   0x1   :  { %2037 = sst [smem:[#allocation15_spill]] %s2019_s0 }
   0x2   :  { %2038 = sst [smem:[#allocation16_spill]] %s2020_s1 }
   0x3   :  { %23 = vsyncpa [#allocation4], 0 }
   0x4   :  { %24 = vsyncpa [#allocation3], 0 }
   0x5   :  { %25 = vsyncpa [#allocation7], 0 }
   0x6   :  { %26 = vsyncpa [#allocation10], 0  ;;  %s47_s26 = sshll.u32 %s2026_s7, 4  ;;  %s48_s26 = int_to_ptr.vmem [resolvable:$true] %s47_s26 }
   0x7   :  { %s1603_s27 = scalar_lea.vmem %s48_s26, 16  ;;  %p1608_p1 = scmp.lt.s32.totalorder %s48_s26, %s48_s26 }
   0x8   :  { %p1604_p0 = scmp.ne.s32.totalorder %s48_s26, %s1603_s27  ;;  %p1609_p2 = scmp.lt.s32.totalorder %s1603_s27, %s1603_s27 }
   0xa   :  { %p1610_p3 = por %p1609_p2, %p1608_p1 }
   0xc   :  { %p1611_p4 = pnand %p1610_p3, %p1604_p0 }
   0xe   :  { %1614 = shalt.err (!%p1611_p4)
}
   0xf   :  { %s1703_s28 = smov [#allocation2]  }
  0x10   :  { %50 = dma.vmem_to_smem %s48_s26, 16, %s1703_s28, [#allocation4]  }
  0x11   :  { %1695 = dma.done.wait [#allocation4], 16  }
  0x12   :  { %1696 = vsyncadd [#allocation4], 4294967280 }
  0x13   :  { %60 = sfence }
  0x14   :  { %v1571_v0 = vld [vmem:[%s2021_s2 + $0x18] sm:$0xff]   ;;  %v1704_v1 = vmov 0.0   ;;  %v1573_v3 = vld [vmem:[%s2021_s2 + $0x10] sm:$0xff]   ;;  %vm1705_vm0 = vmmov 0   ;;  %v1575_v5 = vld [vmem:[%s2021_s2 + $0x8] sm:$0xff]   ;;  %s2039_s7 = sld [smem:[#allocation15_spill]]  ;;  %v263_v32 = vlaneseq }
  0x15   :  { %1458 = vmatprep.subr.bf16.mxu0 %v1704_v1  ;;  %1470 = vmatprep.subr.bf16.mxu1 %v1704_v1  ;;  %v1572_v2 = vld [vmem:[%s2023_s4 + $0x18] sm:$0xff]   ;;  %v1574_v4 = vld [vmem:[%s2023_s4 + $0x10] sm:$0xff]   ;;  %v1576_v6 = vld [vmem:[%s2023_s4 + $0x8] sm:$0xff]   ;;  %vm102_vm1 = vcmask 523264   ;;  %s2040_s19 = sld [smem:[#allocation16_spill]]  ;;  %v1706_v12 = vmov 0  }
  0x16   :  { %1459 = vmatpush3.bf16.msra.mxu0 %v1571_v0  ;;  %1466 = vmatprep.mubr.msk.bf16.mxu0 %vm1705_vm0, %v1704_v1  ;;  %v1577_v7 = vld [vmem:[%s2021_s2] sm:$0xff]   ;;  %v1707_v13 = vmov 1   ;;  %vm243_vm2 = vcmask 261120   ;;  %s1709_s25 = smov 64   ;;  %v1886_v34 = vand.u32 127, %v263_v32  ;;  %vm271_vm4 = vcmask 130048  }
  0x17   :  { %1471 = vmatpush3.bf16.msra.mxu1 %v1572_v2  ;;  %1460 = vmatprep.subr.bf16.mxu0 %v1704_v1  ;;  %v1578_v8 = vld [vmem:[%s2023_s4] sm:$0xff]   ;;  %vm443_vm6 = vcmask 64512   ;;  %s1710_s4 = smov [#allocation6]   ;;  %s1711_s20 = smov [#allocation5]  }
  0x18   :  { %1472 = vmatprep.subr.bf16.mxu1 %v1704_v1  ;;  %1478 = vmatprep.mubr.msk.bf16.mxu1 %vm1705_vm0, %v1704_v1  ;;  %v260_v11 = vld [vmem:[%s2027_s8] sm:$0xff]  ;;  %s1708_s8 = smov 96   ;;  %s1312_s1 = sshll.u32 %s1710_s4, 4  ;;  %s1313_s1 = int_to_ptr.vmem [resolvable:$true] %s1312_s1 }
  0x19   :  { %1567 = vset.pattern.permute.xlu1 %v1706_v12  ;;  %1569 = vset.pattern.permute.xlu0 %v1706_v12  ;;  %v1371_v14 = vld [vmem:[%s2022_s3] ss:$0 sm:$0xff]  ;;  %v1391_v60 = vld [vmem:[%s2025_s6 + $0x3] ss:$0 sm:$0xff]  ;;  %v1403_v12 = vld [vmem:[%s2025_s6 + $0x4] ss:$0 sm:$0xff]  ;;  %p1620_p6 = scmp.lt.s32.totalorder %s1313_s1, %s1313_s1 }
  0x1a   :  { %1461 = vmatpush3.bf16.msra.mxu0 %v1573_v3  ;;  %v62_v9 = vld [vmem:[%s2039_s7] sm:$0xf]  ;;  %266 = vperm.xlu1 %1567, %v260_v11   ;;  %s1300_s21 = sshll.u32 %s1711_s20, 4  ;;  %s1615_s22 = scalar_lea.vmem %s1313_s1, 256  ;;  %s1301_s21 = int_to_ptr.vmem [resolvable:$true] %s1300_s21 }
  0x1b   :  { %1473 = vmatpush3.bf16.msra.mxu1 %v1574_v4  ;;  %1462 = vmatprep.subr.bf16.mxu0 %v1704_v1  ;;  %v147_v10 = vld [vmem:[%s2040_s19] sm:$0xf]  ;;  %p1616_p5 = scmp.ne.s32.totalorder %s1313_s1, %s1615_s22  ;;  %p1621_p7 = scmp.lt.s32.totalorder %s1615_s22, %s1615_s22 }
  0x1c   :  { %1474 = vmatprep.subr.bf16.mxu1 %v1704_v1  ;;  %v1377_v15 = vld [vmem:[%s2024_s5] ss:$0 sm:$0xff]  ;;  %v1398_v4 = vld [vmem:[%s2025_s6 + $0x1] ss:$0 sm:$0xff] }
  0x1d   :  { %v261_v29 = vld [vmem:[%s2028_s9] sm:$0xff]  ;;  %p1622_p8 = por %p1621_p7, %p1620_p6 }
  0x1e   :  { %1463 = vmatpush3.bf16.msra.mxu0 %v1575_v5  ;;  %1568 = vset.pattern.permute.xlu1 %v1707_v13  ;;  %v262_v31 = vld [vmem:[%s2029_s10] sm:$0xff] }
  0x1f   :  { %1475 = vmatpush3.bf16.msra.mxu1 %v1576_v6  ;;  %1464 = vmatprep.subr.bf16.mxu0 %v1704_v1  ;;  %v1387_v53 = vld [vmem:[%s2025_s6] ss:$0 sm:$0xff]  ;;  %p1623_p9 = pnand %p1622_p8, %p1616_p5 }
  0x20   :  { %1476 = vmatprep.subr.bf16.mxu1 %v1704_v1  ;;  %346 = vperm.xlu1 %1568, %v260_v11  }
  0x22   :  { %1465 = vmatpush3.bf16.msra.mxu0 %v1577_v7 }
  0x23   :  { %1477 = vmatpush3.bf16.msra.mxu1 %v1578_v8  ;;  %1482 = vmatprep.subr.mxu0 %v1704_v1 }
  0x24   :  { %1489 = vmatprep.subr.mxu1 %v1704_v1 }
  0x25   :  { %1467 = vmatmul.mubr.msk.bf16.vlgmr.msra.gmra.mxu0 %vm102_vm1, %v62_v9 }
  0x26   :  { %1479 = vmatmul.mubr.msk.bf16.vlgmr.msra.gmra.mxu1 %vm102_vm1, %v147_v10  ;;  %1486 = vmatprep.mubr.msk.f32.mxu0 %vm1705_vm0, %v1704_v1 }
  0x27   :  { %1493 = vmatprep.mubr.msk.f32.mxu1 %vm1705_vm0, %v1704_v1 }
  0x95   :  { %v267_v33 = vpop.permute.xlu1 %266 }
  0x96   :  { %vm268_vm5 = vcmp.eq.s32.totalorder %v1886_v34, %v267_v33 }
  0x97   :  { %v1383_v39 = vsel %vm268_vm5, 1.0, %v1704_v1 }
  0x9b   :  { %v347_v35 = vpop.permute.xlu1 %346 }
  0x9c   :  { %vm348_vm3 = vcmp.eq.s32.totalorder %v1886_v34, %v347_v35 }
  0x9d   :  { %v1385_v37 = vsel %vm348_vm3, 1.0, %v1704_v1 }
  0xe5   :  { %v140_v16 = vpop.f32.mrf.mxu0 }
  0xe6   :  { %v141_v17 = vadd.f32 %v1371_v14, %v140_v16  ;;  %v224_v18 = vpop.f32.mrf.mxu1 }
  0xe7   :  { %v225_v19 = vadd.f32 %v1377_v15, %v224_v18  ;;  %v1468_v20 = vpop.f32.mrf.mxu0 }
  0xe8   :  { %v1866_v21 = vmax.f32 %v141_v17, 0.0  ;;  %v1480_v22 = vpop.f32.mrf.mxu1  ;;  %v1410_v20 = vld [vmem:[%s2025_s6 + $0x2] ss:$0 sm:$0xff] }
  0xe9   :  { %v1868_v23 = vmax.f32 %v225_v19, 0.0  ;;  %v143_v24 = vpop.f32.mrf.mxu0 }
  0xea   :  { %v227_v25 = vpop.f32.mrf.mxu1  ;;  %235 = vrot.lane.b32.xlu0 %v1866_v21, %s1708_s8  ;;  %244 = vst.msk [vmem:[#allocation5] sm:$0xff] %vm243_vm2, %v1866_v21 }
  0xeb   :  { %v1469_v26 = vpop.f32.mrf.mxu0  ;;  %252 = vst.msk [vmem:[#allocation8] sm:$0xff] %vm243_vm2, %v1868_v23 }
  0xec   :  { %v1481_v27 = vpop.f32.mrf.mxu1 }
  0xed   :  { %v1415_v27 = vld [vmem:[%s2025_s6 + $0x5] ss:$0 sm:$0xff] }
  0xee   :  { %241 = vrot.lane.b32.xlu0 %v1868_v23, %s1708_s8 }
 0x15c   :  { %v236_v28 = vpop.permute.xlu0 %235 }
 0x15d   :  { %250 = vst.msk [vmem:[#allocation6] sm:$0xff] %vm243_vm2, %v236_v28  ;;  %246 = vrot.lane.b32.xlu0 %v236_v28, %s1708_s8 }
 0x160   :  { %v242_v30 = vpop.permute.xlu0 %241 }
 0x161   :  { %258 = vst.msk [vmem:[#allocation9] sm:$0xff] %vm243_vm2, %v242_v30  ;;  %612 = vperm.xlu0 %1569, %v261_v29   ;;  %254 = vrot.lane.b32.xlu1 %v242_v30, %s1708_s8 }
 0x165   :  { %954 = vperm.xlu0 %1569, %v262_v31   ;;  %691 = vperm.xlu1 %1568, %v261_v29  }
 0x169   :  { %238 = vrot.lane.b32.xlu0 %v1868_v23, %s1709_s25  ;;  %232 = vrot.lane.b32.xlu1 %v1866_v21, %s1709_s25 }
 0x16a   :  { %1570 = vset.pattern.permute.xlu0 %v1707_v13 }
 0x16d   :  { %1033 = vperm.xlu1 %1568, %v262_v31  }
 0x1cf   :  { %v247_v36 = vpop.permute.xlu0 %246 }
 0x1d0   :  { %251 = vst.msk [vmem:[#allocation6 + $0x8] sm:$0xff] %vm243_vm2, %v247_v36  ;;  %1490 = vmatpush3.msra.mxu1 %v247_v36 }
 0x1d1   :  { %1491 = vmatprep.subr.mxu1 %v1704_v1 }
 0x1d2   :  { %1492 = vmatpush3.msra.mxu1 %v236_v28 }
 0x1d3   :  { %v255_v38 = vpop.permute.xlu1 %254  ;;  %1494 = vmatmul.mubr.msk.f32.vlgmr.msra.gmra.mxu1 %vm271_vm4, %v1385_v37  ;;  %1501 = vmatprep.subr.mxu1 %v1704_v1 }
 0x1d4   :  { %259 = vst.msk [vmem:[#allocation9 + $0x8] sm:$0xff] %vm243_vm2, %v255_v38  ;;  %1483 = vmatpush3.msra.mxu0 %v255_v38  ;;  %1503 = vmatprep.mubr.msk.f32.mxu1 %vm1705_vm0, %v1704_v1 }
 0x1d5   :  { %1484 = vmatprep.subr.mxu0 %v1704_v1 }
 0x1d6   :  { %1485 = vmatpush3.msra.mxu0 %v242_v30 }
 0x1d7   :  { %1487 = vmatmul.mubr.msk.f32.vlgmr.msra.gmra.mxu0 %vm271_vm4, %v1383_v39  ;;  %1496 = vmatprep.subr.mxu0 %v1704_v1 }
 0x1d8   :  { %1498 = vmatprep.mubr.msk.f32.mxu0 %vm1705_vm0, %v1704_v1 }
 0x1dc   :  { %v613_v40 = vpop.permute.xlu0 %612 }
 0x1dd   :  { %vm614_vm7 = vcmp.eq.s32.totalorder %v1886_v34, %v613_v40 }
 0x1de   :  { %v1394_v45 = vsel %vm614_vm7, 1.0, %v1704_v1 }
 0x1e0   :  { %v692_v41 = vpop.permute.xlu1 %691  ;;  %v955_v42 = vpop.permute.xlu0 %954 }
 0x1e1   :  { %vm693_vm8 = vcmp.eq.s32.totalorder %v1886_v34, %v692_v41  ;;  %vm956_vm9 = vcmp.eq.s32.totalorder %v1886_v34, %v955_v42 }
 0x1e2   :  { %v1396_v46 = vsel %vm693_vm8, 1.0, %v1704_v1  ;;  %v1406_v48 = vsel %vm956_vm9, 1.0, %v1704_v1 }
 0x1e4   :  { %v233_v43 = vpop.permute.xlu1 %232  ;;  %v239_v44 = vpop.permute.xlu0 %238 }
 0x1e5   :  { %245 = vst.msk [vmem:[#allocation5 + $0x8] sm:$0xff] %vm243_vm2, %v233_v43  ;;  %253 = vst.msk [vmem:[#allocation8 + $0x8] sm:$0xff] %vm243_vm2, %v239_v44  ;;  %1497 = vmatpush3.msra.mxu0 %v233_v43  ;;  %1502 = vmatpush3.msra.mxu1 %v233_v43 }
 0x1e6   :  { %1499 = vmatmul.mubr.msk.f32.vlgmr.msra.gmra.mxu0 %vm443_vm6, %v1383_v39  ;;  %1504 = vmatmul.mubr.msk.f32.vlgmr.msra.gmra.mxu1 %vm443_vm6, %v1385_v37 }
 0x1e7   :  { %1506 = vmatprep.subr.mxu0 %v1704_v1  ;;  %1513 = vmatprep.subr.mxu1 %v1704_v1 }
 0x1e8   :  { %1507 = vmatpush3.msra.mxu0 %v233_v43  ;;  %1514 = vmatpush3.msra.mxu1 %v233_v43  ;;  %v1034_v47 = vpop.permute.xlu1 %1033 }
 0x1e9   :  { %1508 = vmatprep.subr.mxu0 %v1704_v1  ;;  %1515 = vmatprep.subr.mxu1 %v1704_v1  ;;  %vm1035_vm10 = vcmp.eq.s32.totalorder %v1886_v34, %v1034_v47 }
 0x1ea   :  { %1509 = vmatpush3.msra.mxu0 %v1866_v21  ;;  %1510 = vmatprep.mubr.msk.f32.mxu0 %vm1705_vm0, %v1704_v1  ;;  %v1408_v49 = vsel %vm1035_vm10, 1.0, %v1704_v1 }
 0x1eb   :  { %1516 = vmatpush3.msra.mxu1 %v1866_v21  ;;  %1517 = vmatprep.mubr.msk.f32.mxu1 %vm1705_vm0, %v1704_v1 }
 0x1ec   :  { %1511 = vmatmul.mubr.msk.f32.vlgmr.msra.gmra.mxu0 %vm271_vm4, %v1394_v45  ;;  %1518 = vmatmul.mubr.msk.f32.vlgmr.msra.gmra.mxu1 %vm271_vm4, %v1396_v46 }
 0x1ed   :  { %1520 = vmatprep.subr.mxu0 %v1704_v1  ;;  %1525 = vmatprep.subr.mxu1 %v1704_v1 }
 0x1ee   :  { %1521 = vmatpush3.msra.mxu0 %v233_v43  ;;  %1526 = vmatpush3.msra.mxu1 %v233_v43 }
 0x1ef   :  { %1522 = vmatprep.mubr.msk.f32.mxu0 %vm1705_vm0, %v1704_v1  ;;  %1527 = vmatprep.mubr.msk.f32.mxu1 %vm1705_vm0, %v1704_v1 }
 0x1f0   :  { %1530 = vmatprep.subr.mxu0 %v1704_v1  ;;  %1537 = vmatprep.subr.mxu1 %v1704_v1 }
 0x1f1   :  { %1523 = vmatmul.mubr.msk.f32.vlgmr.msra.gmra.mxu0 %vm443_vm6, %v1394_v45  ;;  %1528 = vmatmul.mubr.msk.f32.vlgmr.msra.gmra.mxu1 %vm443_vm6, %v1396_v46 }
 0x1f2   :  { %1531 = vmatpush3.msra.mxu0 %v239_v44  ;;  %1538 = vmatpush3.msra.mxu1 %v239_v44 }
 0x1f3   :  { %1532 = vmatprep.subr.mxu0 %v1704_v1  ;;  %1539 = vmatprep.subr.mxu1 %v1704_v1 }
 0x1f4   :  { %1533 = vmatpush3.msra.mxu0 %v1868_v23  ;;  %1540 = vmatpush3.msra.mxu1 %v1868_v23 }
 0x1f5   :  { %1534 = vmatprep.mubr.msk.f32.mxu0 %vm1705_vm0, %v1704_v1  ;;  %1541 = vmatprep.mubr.msk.f32.mxu1 %vm1705_vm0, %v1704_v1 }
 0x1f6   :  { %1544 = vmatprep.subr.mxu0 %v1704_v1  ;;  %1549 = vmatprep.subr.mxu1 %v1704_v1 }
 0x1f7   :  { %1535 = vmatmul.mubr.msk.f32.vlgmr.msra.gmra.mxu0 %vm271_vm4, %v1406_v48  ;;  %1542 = vmatmul.mubr.msk.f32.vlgmr.msra.gmra.mxu1 %vm271_vm4, %v1408_v49 }
 0x1f8   :  { %1545 = vmatpush3.msra.mxu0 %v239_v44  ;;  %1550 = vmatpush3.msra.mxu1 %v239_v44 }
 0x1f9   :  { %1546 = vmatprep.mubr.msk.f32.mxu0 %vm1705_vm0, %v1704_v1  ;;  %1551 = vmatprep.mubr.msk.f32.mxu1 %vm1705_vm0, %v1704_v1 }
 0x1fb   :  { %1547 = vmatmul.mubr.msk.f32.vlgmr.msra.gmra.mxu0 %vm443_vm6, %v1406_v48  ;;  %1552 = vmatmul.mubr.msk.f32.vlgmr.msra.gmra.mxu1 %vm443_vm6, %v1408_v49 }
 0x293   :  { %v420_v50 = vpop.f32.mrf.mxu1 }
 0x295   :  { %v1495_v51 = vpop.f32.mrf.mxu1 }
 0x297   :  { %v341_v52 = vpop.f32.mrf.mxu0 }
 0x298   :  { %v425_v54 = vmul.f32 %v420_v50, %v341_v52 }
 0x299   :  { %v1488_v55 = vpop.f32.mrf.mxu0 }
 0x29a   :  { %v430_v56 = vmul.f32 %v1387_v53, %v425_v54 }
 0x29c   :  { %v431_v57 = vsel %vm243_vm2, %v430_v56, 0.0 }
 0x29d   :  { %432 = vadd.xlane.f32.xlu1 %v431_v57 }
 0x2a6   :  { %v512_v58 = vpop.f32.mrf.mxu0  ;;  %v584_v59 = vpop.f32.mrf.mxu1 }
 0x2a7   :  { %v589_v61 = vmul.f32 %v584_v59, %v512_v58 }
 0x2a8   :  { %v1500_v62 = vpop.f32.mrf.mxu0  ;;  %v1505_v63 = vpop.f32.mrf.mxu1 }
 0x2a9   :  { %v594_v0 = vmul.f32 %v1391_v60, %v589_v61 }
 0x2ab   :  { %v595_v1 = vsel %vm243_vm2, %v594_v0, 0.0 }
 0x2ac   :  { %v686_v2 = vpop.f32.mrf.mxu0  ;;  %v765_v3 = vpop.f32.mrf.mxu1  ;;  %596 = vadd.xlane.f32.xlu0 %v595_v1 }
 0x2ad   :  { %v770_v5 = vmul.f32 %v765_v3, %v686_v2 }
 0x2ae   :  { %v1519_v6 = vpop.f32.mrf.mxu1  ;;  %v1512_v7 = vpop.f32.mrf.mxu0 }
 0x2af   :  { %v775_v8 = vmul.f32 %v1398_v4, %v770_v5 }
 0x2b1   :  { %v856_v9 = vpop.f32.mrf.mxu0  ;;  %v928_v10 = vpop.f32.mrf.mxu1  ;;  %v776_v11 = vsel %vm243_vm2, %v775_v8, 0.0 }
 0x2b2   :  { %v933_v13 = vmul.f32 %v928_v10, %v856_v9  ;;  %777 = vadd.xlane.f32.xlu0 %v776_v11 }
 0x2b3   :  { %v1529_v14 = vpop.f32.mrf.mxu1  ;;  %v1524_v15 = vpop.f32.mrf.mxu0 }
 0x2b4   :  { %v938_v16 = vmul.f32 %v1403_v12, %v933_v13 }
 0x2b6   :  { %v939_v17 = vsel %vm243_vm2, %v938_v16, 0.0 }
 0x2b7   :  { %v1028_v18 = vpop.f32.mrf.mxu0  ;;  %v1107_v19 = vpop.f32.mrf.mxu1  ;;  %940 = vadd.xlane.f32.xlu1 %v939_v17 }
 0x2b8   :  { %v1112_v21 = vmul.f32 %v1107_v19, %v1028_v18 }
 0x2b9   :  { %v1543_v22 = vpop.f32.mrf.mxu1  ;;  %v1536_v23 = vpop.f32.mrf.mxu0 }
 0x2ba   :  { %v1117_v24 = vmul.f32 %v1410_v20, %v1112_v21 }
 0x2bb   :  { %v1198_v25 = vpop.f32.mrf.mxu0  ;;  %v1270_v26 = vpop.f32.mrf.mxu1 }
 0x2bc   :  { %v1275_v28 = vmul.f32 %v1270_v26, %v1198_v25  ;;  %v1118_v29 = vsel %vm243_vm2, %v1117_v24, 0.0 }
 0x2bd   :  { %v1553_v30 = vpop.f32.mrf.mxu1  ;;  %1119 = vadd.xlane.f32.xlu0 %v1118_v29  ;;  %v1548_v31 = vpop.f32.mrf.mxu0 }
 0x2be   :  { %v1280_v32 = vmul.f32 %v1415_v27, %v1275_v28 }
 0x2c0   :  { %v1281_v33 = vsel %vm243_vm2, %v1280_v32, 0.0 }
 0x2c1   :  { %1282 = vadd.xlane.f32.xlu1 %v1281_v33 }
 0x2c2   :  { %1626 = shalt.err (!%p1623_p9)
}
 0x2c3   :  { %s1712_s6 = smov 128   ;;  %s1713_s8 = smov 8  }
 0x2c4   :  { %1318 = dma.vmem_to_hbm [thread:$0]  %s1313_s1, 256, %s2031_s12, [#allocation7], %s1712_s6, %s1712_s6, %s1713_s8  }
 0x2c5   :  { %s1635_s23 = scalar_lea.vmem %s1301_s21, 256  ;;  %p1640_p11 = scmp.lt.s32.totalorder %s1301_s21, %s1301_s21 }
 0x2c6   :  { %p1636_p10 = scmp.ne.s32.totalorder %s1301_s21, %s1635_s23  ;;  %p1641_p12 = scmp.lt.s32.totalorder %s1635_s23, %s1635_s23 }
 0x2c8   :  { %p1642_p13 = por %p1641_p12, %p1640_p11 }
 0x2ca   :  { %p1643_p0 = pnand %p1642_p13, %p1636_p10 }
 0x2cc   :  { %1646 = shalt.err (!%p1643_p0)
}
 0x2cd   :  { %1306 = dma.vmem_to_hbm [thread:$0]  %s1301_s21, 256, %s2030_s11, [#allocation3], %s1712_s6, %s1712_s6, %s1713_s8  }
 0x2ce   :  { %s1714_s9 = smov [#allocation8]   ;;  %s1715_s26 = smov [#allocation9]  }
 0x2cf   :  { %s1324_s10 = sshll.u32 %s1714_s9, 4  ;;  %s1336_s12 = sshll.u32 %s1715_s26, 4  ;;  %s1325_s10 = int_to_ptr.vmem [resolvable:$true] %s1324_s10  ;;  %s1337_s12 = int_to_ptr.vmem [resolvable:$true] %s1336_s12 }
 0x2d0   :  { %s1655_s27 = scalar_lea.vmem %s1325_s10, 256  ;;  %p1660_p2 = scmp.lt.s32.totalorder %s1325_s10, %s1325_s10 }
 0x2d1   :  { %p1656_p1 = scmp.ne.s32.totalorder %s1325_s10, %s1655_s27  ;;  %p1661_p3 = scmp.lt.s32.totalorder %s1655_s27, %s1655_s27 }
 0x2d3   :  { %p1662_p4 = por %p1661_p3, %p1660_p2 }
 0x2d5   :  { %p1663_p5 = pnand %p1662_p4, %p1656_p1 }
 0x2d7   :  { %1666 = shalt.err (!%p1663_p5)
}
 0x2d8   :  { %1330 = dma.vmem_to_hbm [thread:$0]  %s1325_s10, 256, %s2032_s13, [#allocation7], %s1712_s6, %s1712_s6, %s1713_s8  }
 0x2d9   :  { %s1675_s11 = scalar_lea.vmem %s1337_s12, 256  ;;  %p1680_p7 = scmp.lt.s32.totalorder %s1337_s12, %s1337_s12 }
 0x2da   :  { %p1676_p6 = scmp.ne.s32.totalorder %s1337_s12, %s1675_s11  ;;  %p1681_p8 = scmp.lt.s32.totalorder %s1675_s11, %s1675_s11 }
 0x2dc   :  { %p1682_p9 = por %p1681_p8, %p1680_p7 }
 0x2de   :  { %p1683_p10 = pnand %p1682_p9, %p1676_p6 }
 0x2e0   :  { %1686 = shalt.err (!%p1683_p10)
}
 0x2e1   :  { %1342 = dma.vmem_to_hbm [thread:$0]  %s1337_s12, 256, %s2033_s14, [#allocation10], %s1712_s6, %s1712_s6, %s1713_s8   ;;  %vm607_vm11 = vcmask 7168   ;;  %vm609_vm12 = vcmask 15360  }
 0x2e2   :  { %s434_s30 = sld [smem:[#allocation2]] }
 0x2e3   :  { %s1392_s18 = sld [smem:[#allocation2 + $0x3]] }
 0x2e4   :  { %s1399_s13 = sld [smem:[#allocation2 + $0x1]] }
 0x2e5   :  { %s1404_s19 = sld [smem:[#allocation2 + $0x4]] }
 0x2e6   :  { %s1411_s2 = sld [smem:[#allocation2 + $0x2]] }
 0x2e7   :  { %s1416_s14 = sld [smem:[#allocation2 + $0x5]] }
 0x2e8   :  { %v435_v34 = vstv %s434_s30 }
 0x2e9   :  { %v599_v38 = vstv %s1392_s18 }
 0x2ea   :  { %v780_v42 = vstv %s1399_s13 }
 0x2eb   :  { %v943_v46 = vstv %s1404_s19 }
 0x2ec   :  { %v1122_v51 = vstv %s1411_s2 }
 0x2ed   :  { %v1285_v57 = vstv %s1416_s14 }
 0x326   :  { %v433_v35 = vpop.xlane.xlu1 %432 }
 0x327   :  { %v436_v36 = vadd.f32 %v435_v34, %v433_v35 }
 0x329   :  { %v1388_v37 = vmul.f32 -1.442695, %v436_v36 }
 0x32b   :  { %1579 = vpow2.f32 %v1388_v37 }
 0x335   :  { %v597_v39 = vpop.xlane.xlu0 %596 }
 0x336   :  { %v600_v40 = vadd.f32 %v599_v38, %v597_v39 }
 0x338   :  { %v1393_v41 = vmul.f32 -1.442695, %v600_v40  ;;  %v1580_v49 = vpop.eup %1579 }
 0x339   :  { %v440_v52 = vadd.f32 1.0, %v1580_v49 }
 0x33a   :  { %1581 = vpow2.f32 %v1393_v41 }
 0x33b   :  { %v778_v43 = vpop.xlane.xlu0 %777 }
 0x33c   :  { %v781_v44 = vadd.f32 %v780_v42, %v778_v43 }
 0x33e   :  { %v1400_v45 = vmul.f32 -1.442695, %v781_v44 }
 0x340   :  { %1583 = vpow2.f32 %v1400_v45  ;;  %v941_v47 = vpop.xlane.xlu1 %940 }
 0x341   :  { %v944_v48 = vadd.f32 %v943_v46, %v941_v47 }
 0x343   :  { %v1405_v50 = vmul.f32 -1.442695, %v944_v48 }
 0x345   :  { %1585 = vpow2.f32 %v1405_v50 }
 0x346   :  { %v1120_v53 = vpop.xlane.xlu0 %1119  ;;  %1587 = vrcp.f32 %v440_v52 }
 0x347   :  { %v1582_v54 = vpop.eup %1581  ;;  %v1123_v55 = vadd.f32 %v1122_v51, %v1120_v53 }
 0x348   :  { %v604_v56 = vadd.f32 1.0, %v1582_v54 }
 0x349   :  { %v1412_v58 = vmul.f32 -1.442695, %v1123_v55 }
 0x34a   :  { %1589 = vrcp.f32 %v604_v56  ;;  %v1283_v59 = vpop.xlane.xlu1 %1282 }
 0x34b   :  { %1591 = vpow2.f32 %v1412_v58  ;;  %v1286_v60 = vadd.f32 %v1285_v57, %v1283_v59 }
 0x34d   :  { %v1584_v61 = vpop.eup %1583  ;;  %v1417_v62 = vmul.f32 -1.442695, %v1286_v60 }
 0x34e   :  { %v785_v63 = vadd.f32 1.0, %v1584_v61 }
 0x34f   :  { %1593 = vpow2.f32 %v1417_v62 }
 0x350   :  { %1595 = vrcp.f32 %v785_v63 }
 0x352   :  { %v1586_v0 = vpop.eup %1585 }
 0x353   :  { %v948_v1 = vadd.f32 1.0, %v1586_v0  ;;  %v1588_v2 = vpop.eup %1587 }
 0x355   :  { %1597 = vrcp.f32 %v948_v1 }
 0x357   :  { %v1590_v3 = vpop.eup %1589 }
 0x358   :  { %v1592_v4 = vpop.eup %1591  ;;  %v608_v5 = vsel %vm607_vm11, %v1588_v2, %v1590_v3 }
 0x359   :  { %610 = vst.msk [vmem:[%s2034_s15] sm:$0xff] %vm609_vm12, %v608_v5  ;;  %v1127_v6 = vadd.f32 1.0, %v1592_v4 }
 0x35b   :  { %1599 = vrcp.f32 %v1127_v6 }
 0x35c   :  { %v1594_v7 = vpop.eup %1593 }
 0x35d   :  { %v1290_v8 = vadd.f32 1.0, %v1594_v7  ;;  %v1596_v9 = vpop.eup %1595 }
 0x35f   :  { %1601 = vrcp.f32 %v1290_v8 }
 0x362   :  { %v1598_v10 = vpop.eup %1597 }
 0x363   :  { %v951_v11 = vsel %vm607_vm11, %v1596_v9, %v1598_v10 }
 0x364   :  { %952 = vst.msk [vmem:[%s2035_s16] sm:$0xff] %vm609_vm12, %v951_v11 }
 0x368   :  { %v1600_v12 = vpop.eup %1599 }
 0x36c   :  { %v1602_v13 = vpop.eup %1601 }
 0x36d   :  { %v1293_v14 = vsel %vm607_vm11, %v1600_v12, %v1602_v13 }
 0x36e   :  { %1294 = vst.msk [vmem:[%s2036_s17] sm:$0xff] %vm609_vm12, %v1293_v14 }
 0x36f   :  { %1697 = dma.done.wait [#allocation3], 256  }
 0x370   :  { %1698 = vsyncadd [#allocation3], 4294967040 }
 0x371   :  { %1699 = dma.done.wait [#allocation7], 512  }
 0x372   :  { %1700 = vsyncadd [#allocation7], 4294966784 }
 0x373   :  { %1701 = dma.done.wait [#allocation10], 256  }
 0x374   :  { %1702 = vsyncadd [#allocation10], 4294967040 }
 0x375   :  { %1367 = vsyncpa [#allocation3], 1 }
 0x376   :  { %1368 = vsyncpa [#allocation7], 1 }
 0x377   :  { %1369 = vsyncpa [#allocation10], 1 }
 0x378   :  { %1370 = vsyncpa [#allocation4], 1 }

</bundles_post_ra>
